<compile_context>
chip_gen: v6e
topology: v6e:2x2x1
jax: 0.10.0
libtpu: 0.0.40
codegen_flags: <defaults>
</compile_context>

<pallas_src>
import math
from functools import partial

import jax
import jax.numpy as jnp
import numpy as np
from jax.experimental import pallas as pl
from jax.experimental.pallas import tpu as pltpu


# ----------------------------------------------------------------------------
# Fused per-batch kernel
# ----------------------------------------------------------------------------
def _fused_attention_kernel(x_ref, wq_ref, bq_ref, kbd_ref, vbd_ref,
                            blockones_ref, csum_ref, wo_ref, bo_ref,
                            out_ref, attn_ref, sim_ref):
    x = x_ref[0]                                                        # (L, D)

    # Packed query projection (all heads at once).
    q = jnp.dot(x, wq_ref[...], preferred_element_type=jnp.float32) + bq_ref[...]  # (L, H*E)

    # Packed scores against block-diagonal, pre-scaled prototype keys.
    s = jnp.dot(q, kbd_ref[...], preferred_element_type=jnp.float32)   # (L, H*N)

    # Per-head softmax over each N-block without reshapes:
    # a row-global max is a valid stabilising constant for every head block,
    # and the per-head denominator is p @ blockones (block matrix of ones).
    m = jnp.max(s, axis=-1, keepdims=True)
    p = jnp.exp(s - m)                                                  # (L, H*N)
    denom = jnp.dot(p, blockones_ref[...], preferred_element_type=jnp.float32)  # (L, H*N)
    attn = p * pl.reciprocal(denom, approx=True)                        # (L, H*N)

    # Attention context, already in head-merged (L, H*Dv) layout.
    ctx = jnp.dot(attn, vbd_ref[...], preferred_element_type=jnp.float32)        # (L, H*Dv)

    # Fused output projection.
    out = jnp.dot(ctx, wo_ref[...], preferred_element_type=jnp.float32) + bo_ref[...]  # (L, D)

    # sim_l: sum_h sum_m einsum('bhln,mn->bhlm') == attn_packed @ tiled colsum(softmax(amap))
    sim = jnp.dot(attn, csum_ref[...], preferred_element_type=jnp.float32)       # (L, 1)

    out_ref[...] = out[None].astype(out_ref.dtype)
    attn_ref[...] = attn[None].astype(attn_ref.dtype)
    sim_ref[...] = sim[None].astype(sim_ref.dtype)


# ----------------------------------------------------------------------------
# Wrapper: trace-time parameter packing + one pallas_call
# ----------------------------------------------------------------------------
def attention_layer_forward(params, queries, keys=None, values=None,
                            attn_mask=None, *, n_heads):
    # `keys`, `values`, `attn_mask` mirror the PyTorch signature but are unused:
    # the module replaces them with learned prototypes and the mask is never
    # applied by any returned tensor.
    del keys, values, attn_mask
    x = queries
    B, L, D = x.shape
    H = n_heads
    E = D // H                       # d_keys
    Dv = D // H                      # d_values
    N = params["keys"].shape[0]      # num_proto
    scale = 1.0 / math.sqrt(E)

    # ---- trace-time parameter packing (tiny, constant per forward) ---------
    eye_h = jnp.eye(H, dtype=jnp.float32)

    # Block-diagonal prototype keys, scale folded in: (H*E, H*N).
    k_heads = params["keys"].reshape(N, H, E).transpose(1, 2, 0)            # (H, E, N)
    kbd = (k_heads[:, :, None, :] * eye_h[:, None, :, None]).reshape(H * E, H * N) * scale

    # Block-diagonal prototype values: (H*N, H*Dv).
    v_heads = params["values"].reshape(N, H, Dv).transpose(1, 0, 2)         # (H, N, Dv)
    vbd = (v_heads[:, :, None, :] * eye_h[:, None, :, None]).reshape(H * N, H * Dv)

    # Block matrix of ones for the packed per-head softmax denominator.
    blockones = jnp.kron(eye_h, jnp.ones((N, N), dtype=jnp.float32))        # (H*N, H*N)

    # Grid-invariant attn_map softmax hoisted out of the kernel and reduced to
    # a column-sum vector, tiled over heads.
    amap_sm = jax.nn.softmax(params["attn_map"].astype(jnp.float32), axis=-1)
    csum = jnp.tile(jnp.sum(amap_sm, axis=0), H).reshape(H * N, 1)          # (H*N, 1)

    bq = params["bq"].reshape(1, H * E)
    bo = params["bo"].reshape(1, D)

    # TODO(synk): sigma_projection (and attn_mask) feed only the Gaussian-prior
    # branch of the injected inner_attention, which does not affect any
    # returned tensor, so the dead sigma matmul is omitted entirely.

    out, attn_packed, sim = pl.pallas_call(
        _fused_attention_kernel,
        out_shape=(
            jax.ShapeDtypeStruct((B, L, D), jnp.float32),
            jax.ShapeDtypeStruct((B, L, H * N), jnp.float32),
            jax.ShapeDtypeStruct((B, L, 1), jnp.float32),
        ),
        grid_spec=pltpu.PrefetchScalarGridSpec(
            num_scalar_prefetch=0,
            grid=(B,),
            in_specs=[
                pl.BlockSpec((1, L, D), lambda b: (b, 0, 0)),        # x
                pl.BlockSpec((D, H * E), lambda b: (0, 0)),          # Wq (resident)
                pl.BlockSpec((1, H * E), lambda b: (0, 0)),          # bq
                pl.BlockSpec((H * E, H * N), lambda b: (0, 0)),      # K block-diag (pre-scaled)
                pl.BlockSpec((H * N, H * Dv), lambda b: (0, 0)),     # V block-diag
                pl.BlockSpec((H * N, H * N), lambda b: (0, 0)),      # block-ones
                pl.BlockSpec((H * N, 1), lambda b: (0, 0)),          # tiled amap colsum
                pl.BlockSpec((H * Dv, D), lambda b: (0, 0)),         # Wo
                pl.BlockSpec((1, D), lambda b: (0, 0)),              # bo
            ],
            out_specs=[
                pl.BlockSpec((1, L, D), lambda b: (b, 0, 0)),
                pl.BlockSpec((1, L, H * N), lambda b: (b, 0, 0)),
                pl.BlockSpec((1, L, 1), lambda b: (b, 0, 0)),
            ],
        ),
        compiler_params=pltpu.CompilerParams(
            dimension_semantics=("parallel",)),
    )(x, params["Wq"], bq, kbd, vbd, blockones, csum, params["Wo"], bo)

    # Reshape attn to the module's (B, H, L, N) layout outside the kernel so
    # the kernel's attn store stays lane-dense at width H*N.
    attn = attn_packed.reshape(B, L, H, N).transpose(0, 2, 1, 3)
    sim_l = sim[..., 0]                                               # (B, L)
    return out, attn, sim_l


# ----------------------------------------------------------------------------
# Pure-JAX reference (mirrors the torch forward) for a correctness check
# ----------------------------------------------------------------------------
def _reference(params, x, *, n_heads):
    B, L, D = x.shape
    H = n_heads
    E = D // H
    N = params["keys"].shape[0]
    q = (x @ params["Wq"] + params["bq"]).reshape(B, L, H, E)
    k = jnp.broadcast_to(params["keys"].reshape(1, N, H, E), (B, N, H, E))
    v = jnp.broadcast_to(params["values"].reshape(1, N, H, E), (B, N, H, E))
    scores = jnp.einsum("blhe,bshe->bhls", q, k) / math.sqrt(E)
    attn = jax.nn.softmax(scores, axis=-1)
    out = jnp.einsum("bhls,bshd->blhd", attn, v).reshape(B, L, H * E)
    amap = jax.nn.softmax(params["attn_map"], axis=-1)
    sim = jnp.einsum("bhln,mn->bhlm", attn, amap)
    sim_l = jnp.sum(jnp.sum(sim, axis=-1), axis=1)
    out = out @ params["Wo"] + params["bo"]
    return out, attn, sim_l


if __name__ == "__main__":
    # small shapes consistent with the module
    B, L, d_model, n_heads = 2, 8, 32, 4
    num_proto, len_map = 8, 8
    d_keys = d_values = d_model // n_heads

    key = jax.random.PRNGKey(0)
    ks = jax.random.split(key, 10)
    wscale = 0.1
    params = {
        # Linear weights stored already transposed: y = x @ W + b
        "Wq": wscale * jax.random.normal(ks[0], (d_model, d_keys * n_heads), jnp.float32),
        "bq": wscale * jax.random.normal(ks[1], (d_keys * n_heads,), jnp.float32),
        "Ws": wscale * jax.random.normal(ks[2], (d_model, n_heads), jnp.float32),
        "bs": wscale * jax.random.normal(ks[3], (n_heads,), jnp.float32),
        "Wo": wscale * jax.random.normal(ks[4], (d_values * n_heads, d_model), jnp.float32),
        "bo": wscale * jax.random.normal(ks[5], (d_model,), jnp.float32),
        "keys": jax.random.normal(ks[6], (num_proto, d_model), jnp.float32),
        "values": jax.random.normal(ks[7], (num_proto, d_model), jnp.float32),
        "attn_map": jax.random.normal(ks[8], (len_map, num_proto), jnp.float32),
    }

    x = jax.random.normal(ks[9], (B, L, d_model), jnp.float32)

    fwd = jax.jit(partial(attention_layer_forward, n_heads=n_heads))
    out, attn, sim_l = fwd(params, x, x, x, None)
    jax.block_until_ready((out, attn, sim_l))

    out_ref, attn_ref, sim_l_ref = _reference(params, x, n_heads=n_heads)
    # tolerance accounts for the EUP approximate-reciprocal softmax normalization
    np.testing.assert_allclose(np.asarray(out), np.asarray(out_ref), rtol=2e-3, atol=2e-3)
    np.testing.assert_allclose(np.asarray(attn), np.asarray(attn_ref), rtol=2e-3, atol=2e-3)
    np.testing.assert_allclose(np.asarray(sim_l), np.asarray(sim_l_ref), rtol=2e-3, atol=2e-3)

    print("KERNEL_OK")
</pallas_src>

<mosaic_0001>
module attributes {stable_mosaic.version = 11 : i64} {
  func.func @_fused_attention_kernel(%arg0: i32, %arg1: memref<1x8x32xf32, #tpu.memory_space<vmem>>, %arg2: memref<32x32xf32, #tpu.memory_space<vmem>>, %arg3: memref<1x32xf32, #tpu.memory_space<vmem>>, %arg4: memref<32x32xf32, #tpu.memory_space<vmem>>, %arg5: memref<32x32xf32, #tpu.memory_space<vmem>>, %arg6: memref<32x32xf32, #tpu.memory_space<vmem>>, %arg7: memref<32x1xf32, #tpu.memory_space<vmem>>, %arg8: memref<32x32xf32, #tpu.memory_space<vmem>>, %arg9: memref<1x32xf32, #tpu.memory_space<vmem>>, %arg10: memref<1x8x32xf32, #tpu.memory_space<vmem>>, %arg11: memref<1x8x32xf32, #tpu.memory_space<vmem>>, %arg12: memref<1x8x1xf32, #tpu.memory_space<vmem>>) attributes {dimension_semantics = [#tpu.dimension_semantics<parallel>], iteration_bounds = array<i64: 2>, scalar_prefetch = 0 : i64, scratch_operands = 0 : i64, tpu.core_type = #tpu.core_type<tc>, window_params = [{transform_indices = @transform_0, window_bounds = array<i64: 1, 8, 32>}, {pipeline_mode = #tpu.pipeline_mode<synchronous>, transform_indices = @transform_1, window_bounds = array<i64: 32, 32>}, {pipeline_mode = #tpu.pipeline_mode<synchronous>, transform_indices = @transform_2, window_bounds = array<i64: 1, 32>}, {pipeline_mode = #tpu.pipeline_mode<synchronous>, transform_indices = @transform_3, window_bounds = array<i64: 32, 32>}, {pipeline_mode = #tpu.pipeline_mode<synchronous>, transform_indices = @transform_4, window_bounds = array<i64: 32, 32>}, {pipeline_mode = #tpu.pipeline_mode<synchronous>, transform_indices = @transform_5, window_bounds = array<i64: 32, 32>}, {pipeline_mode = #tpu.pipeline_mode<synchronous>, transform_indices = @transform_6, window_bounds = array<i64: 32, 1>}, {pipeline_mode = #tpu.pipeline_mode<synchronous>, transform_indices = @transform_7, window_bounds = array<i64: 32, 32>}, {pipeline_mode = #tpu.pipeline_mode<synchronous>, transform_indices = @transform_8, window_bounds = array<i64: 1, 32>}, {transform_indices = @transform_9, window_bounds = array<i64: 1, 8, 32>}, {transform_indices = @transform_10, window_bounds = array<i64: 1, 8, 32>}, {transform_indices = @transform_11, window_bounds = array<i64: 1, 8, 1>}]} {
    %c0 = arith.constant 0 : index
    %c0_0 = arith.constant 0 : index
    %c0_1 = arith.constant 0 : index
    %0 = vector.load %arg1[%c0, %c0_0, %c0_1] : memref<1x8x32xf32, #tpu.memory_space<vmem>>, vector<1x8x32xf32>
    %1 = vector.shape_cast %0 : vector<1x8x32xf32> to vector<8x32xf32>
    %c0_2 = arith.constant 0 : index
    %c0_3 = arith.constant 0 : index
    %2 = vector.load %arg2[%c0_2, %c0_3] : memref<32x32xf32, #tpu.memory_space<vmem>>, vector<32x32xf32>
    %cst = arith.constant dense<0.000000e+00> : vector<8x32xf32>
    %3 = tpu.matmul %1, %2, %cst {dimension_numbers = #tpu.dot_dimension_numbers<[1], [0], [0], [1], [0, 0, 1, 1], [], []>} : vector<8x32xf32>, vector<32x32xf32>, vector<8x32xf32> -> vector<8x32xf32>
    %c0_4 = arith.constant 0 : index
    %c0_5 = arith.constant 0 : index
    %4 = vector.load %arg3[%c0_4, %c0_5] : memref<1x32xf32, #tpu.memory_space<vmem>>, vector<1x32xf32>
    %5 = vector.broadcast %4 : vector<1x32xf32> to vector<8x32xf32>
    %6 = arith.addf %3, %5 : vector<8x32xf32>
    %c0_6 = arith.constant 0 : index
    %c0_7 = arith.constant 0 : index
    %7 = vector.load %arg4[%c0_6, %c0_7] : memref<32x32xf32, #tpu.memory_space<vmem>>, vector<32x32xf32>
    %cst_8 = arith.constant dense<0.000000e+00> : vector<8x32xf32>
    %8 = tpu.matmul %6, %7, %cst_8 {dimension_numbers = #tpu.dot_dimension_numbers<[1], [0], [0], [1], [0, 0, 1, 1], [], []>} : vector<8x32xf32>, vector<32x32xf32>, vector<8x32xf32> -> vector<8x32xf32>
    %cst_9 = arith.constant dense<0xFF800000> : vector<8xf32>
    %9 = vector.multi_reduction <maximumf>, %8, %cst_9 [1] : vector<8x32xf32> to vector<8xf32>
    %10 = vector.shape_cast %9 : vector<8xf32> to vector<8x1xf32>
    %11 = vector.broadcast %10 : vector<8x1xf32> to vector<8x32xf32>
    %12 = arith.subf %8, %11 : vector<8x32xf32>
    %13 = math.exp %12 : vector<8x32xf32>
    %c0_10 = arith.constant 0 : index
    %c0_11 = arith.constant 0 : index
    %14 = vector.load %arg6[%c0_10, %c0_11] : memref<32x32xf32, #tpu.memory_space<vmem>>, vector<32x32xf32>
    %cst_12 = arith.constant dense<0.000000e+00> : vector<8x32xf32>
    %15 = tpu.matmul %13, %14, %cst_12 {dimension_numbers = #tpu.dot_dimension_numbers<[1], [0], [0], [1], [0, 0, 1, 1], [], []>} : vector<8x32xf32>, vector<32x32xf32>, vector<8x32xf32> -> vector<8x32xf32>
    %16 = tpu.reciprocal %15 {approx = true} : vector<8x32xf32> -> vector<8x32xf32>
    %17 = arith.mulf %13, %16 : vector<8x32xf32>
    %c0_13 = arith.constant 0 : index
    %c0_14 = arith.constant 0 : index
    %18 = vector.load %arg5[%c0_13, %c0_14] : memref<32x32xf32, #tpu.memory_space<vmem>>, vector<32x32xf32>
    %cst_15 = arith.constant dense<0.000000e+00> : vector<8x32xf32>
    %19 = tpu.matmul %17, %18, %cst_15 {dimension_numbers = #tpu.dot_dimension_numbers<[1], [0], [0], [1], [0, 0, 1, 1], [], []>} : vector<8x32xf32>, vector<32x32xf32>, vector<8x32xf32> -> vector<8x32xf32>
    %c0_16 = arith.constant 0 : index
    %c0_17 = arith.constant 0 : index
    %20 = vector.load %arg8[%c0_16, %c0_17] : memref<32x32xf32, #tpu.memory_space<vmem>>, vector<32x32xf32>
    %cst_18 = arith.constant dense<0.000000e+00> : vector<8x32xf32>
    %21 = tpu.matmul %19, %20, %cst_18 {dimension_numbers = #tpu.dot_dimension_numbers<[1], [0], [0], [1], [0, 0, 1, 1], [], []>} : vector<8x32xf32>, vector<32x32xf32>, vector<8x32xf32> -> vector<8x32xf32>
    %c0_19 = arith.constant 0 : index
    %c0_20 = arith.constant 0 : index
    %22 = vector.load %arg9[%c0_19, %c0_20] : memref<1x32xf32, #tpu.memory_space<vmem>>, vector<1x32xf32>
    %23 = vector.broadcast %22 : vector<1x32xf32> to vector<8x32xf32>
    %24 = arith.addf %21, %23 : vector<8x32xf32>
    %c0_21 = arith.constant 0 : index
    %c0_22 = arith.constant 0 : index
    %25 = vector.load %arg7[%c0_21, %c0_22] : memref<32x1xf32, #tpu.memory_space<vmem>>, vector<32x1xf32>
    %cst_23 = arith.constant dense<0.000000e+00> : vector<8x1xf32>
    %26 = tpu.matmul %17, %25, %cst_23 {dimension_numbers = #tpu.dot_dimension_numbers<[1], [0], [0], [1], [0, 0, 1, 1], [], []>} : vector<8x32xf32>, vector<32x1xf32>, vector<8x1xf32> -> vector<8x1xf32>
    %27 = vector.shape_cast %24 : vector<8x32xf32> to vector<1x8x32xf32>
    %c0_24 = arith.constant 0 : index
    %c0_25 = arith.constant 0 : index
    %c0_26 = arith.constant 0 : index
    %28 = vector.load %arg10[%c0_24, %c0_25, %c0_26] : memref<1x8x32xf32, #tpu.memory_space<vmem>>, vector<1x8x32xf32>
    tpu.vector_store %arg10[%c0_24, %c0_25, %c0_26], %27 {strides = array<i32>} : memref<1x8x32xf32, #tpu.memory_space<vmem>>, vector<1x8x32xf32>,
    %29 = vector.shape_cast %17 : vector<8x32xf32> to vector<1x8x32xf32>
    %c0_27 = arith.constant 0 : index
    %c0_28 = arith.constant 0 : index
    %c0_29 = arith.constant 0 : index
    %30 = vector.load %arg11[%c0_27, %c0_28, %c0_29] : memref<1x8x32xf32, #tpu.memory_space<vmem>>, vector<1x8x32xf32>
    tpu.vector_store %arg11[%c0_27, %c0_28, %c0_29], %29 {strides = array<i32>} : memref<1x8x32xf32, #tpu.memory_space<vmem>>, vector<1x8x32xf32>,
    %31 = vector.shape_cast %26 : vector<8x1xf32> to vector<1x8x1xf32>
    %c0_30 = arith.constant 0 : index
    %c0_31 = arith.constant 0 : index
    %c0_32 = arith.constant 0 : index
    %32 = vector.load %arg12[%c0_30, %c0_31, %c0_32] : memref<1x8x1xf32, #tpu.memory_space<vmem>>, vector<1x8x1xf32>
    tpu.vector_store %arg12[%c0_30, %c0_31, %c0_32], %31 {strides = array<i32>} : memref<1x8x1xf32, #tpu.memory_space<vmem>>, vector<1x8x1xf32>,
    return
  }
  func.func @transform_0(%arg0: i32) -> (i32, i32, i32) {
    %c0_i32 = arith.constant 0 : i32
    %c0_i32_0 = arith.constant 0 : i32
    %c0_i32_1 = arith.constant 0 : i32
    return %arg0, %c0_i32, %c0_i32_0 : i32, i32, i32
  }
  func.func @transform_1(%arg0: i32) -> (i32, i32) {
    %c0_i32 = arith.constant 0 : i32
    %c0_i32_0 = arith.constant 0 : i32
    %c0_i32_1 = arith.constant 0 : i32
    return %c0_i32, %c0_i32_0 : i32, i32
  }
  func.func @transform_2(%arg0: i32) -> (i32, i32) {
    %c0_i32 = arith.constant 0 : i32
    %c0_i32_0 = arith.constant 0 : i32
    %c0_i32_1 = arith.constant 0 : i32
    return %c0_i32, %c0_i32_0 : i32, i32
  }
  func.func @transform_3(%arg0: i32) -> (i32, i32) {
    %c0_i32 = arith.constant 0 : i32
    %c0_i32_0 = arith.constant 0 : i32
    %c0_i32_1 = arith.constant 0 : i32
    return %c0_i32, %c0_i32_0 : i32, i32
  }
  func.func @transform_4(%arg0: i32) -> (i32, i32) {
    %c0_i32 = arith.constant 0 : i32
    %c0_i32_0 = arith.constant 0 : i32
    %c0_i32_1 = arith.constant 0 : i32
    return %c0_i32, %c0_i32_0 : i32, i32
  }
  func.func @transform_5(%arg0: i32) -> (i32, i32) {
    %c0_i32 = arith.constant 0 : i32
    %c0_i32_0 = arith.constant 0 : i32
    %c0_i32_1 = arith.constant 0 : i32
    return %c0_i32, %c0_i32_0 : i32, i32
  }
  func.func @transform_6(%arg0: i32) -> (i32, i32) {
    %c0_i32 = arith.constant 0 : i32
    %c0_i32_0 = arith.constant 0 : i32
    %c0_i32_1 = arith.constant 0 : i32
    return %c0_i32, %c0_i32_0 : i32, i32
  }
  func.func @transform_7(%arg0: i32) -> (i32, i32) {
    %c0_i32 = arith.constant 0 : i32
    %c0_i32_0 = arith.constant 0 : i32
    %c0_i32_1 = arith.constant 0 : i32
    return %c0_i32, %c0_i32_0 : i32, i32
  }
  func.func @transform_8(%arg0: i32) -> (i32, i32) {
    %c0_i32 = arith.constant 0 : i32
    %c0_i32_0 = arith.constant 0 : i32
    %c0_i32_1 = arith.constant 0 : i32
    return %c0_i32, %c0_i32_0 : i32, i32
  }
  func.func @transform_9(%arg0: i32) -> (i32, i32, i32) {
    %c0_i32 = arith.constant 0 : i32
    %c0_i32_0 = arith.constant 0 : i32
    %c0_i32_1 = arith.constant 0 : i32
    return %arg0, %c0_i32, %c0_i32_0 : i32, i32, i32
  }
  func.func @transform_10(%arg0: i32) -> (i32, i32, i32) {
    %c0_i32 = arith.constant 0 : i32
    %c0_i32_0 = arith.constant 0 : i32
    %c0_i32_1 = arith.constant 0 : i32
    return %arg0, %c0_i32, %c0_i32_0 : i32, i32, i32
  }
  func.func @transform_11(%arg0: i32) -> (i32, i32, i32) {
    %c0_i32 = arith.constant 0 : i32
    %c0_i32_0 = arith.constant 0 : i32
    %c0_i32_1 = arith.constant 0 : i32
    return %arg0, %c0_i32, %c0_i32_0 : i32, i32, i32
  }
}

</mosaic_0001>

<bundles_post_ra>
// kernel: tile.8
= control target key start
LH: loop header
LB: loop body
LE: loop exit
PB: predicated region body
PF: predicated region fallthrough
CT: control target
= control target key end

     0   :  { %s22_s0 = inlined_call_operand.vmem [shape: f32[8], index: 0, kind: input, shape index: {}]   ;;  %s23_s1 = inlined_call_operand.vmem [shape: f32[4,8], index: 1, kind: output, shape index: {}]  }
   0x1   :  { %v4_v0 = vld [vmem:[%s22_s0] ss:$0 sm:$0xff] }
   0x2   :  { %5 = vst [vmem:[%s23_s1] sm:$0xf] %v4_v0 }

// kernel: tile.0
= control target key start
LH: loop header
LB: loop body
LE: loop exit
PB: predicated region body
PF: predicated region fallthrough
CT: control target
= control target key end

     0   :  { %s67_s8 = smov 125   ;;  %vm8_vm0 = vcmask 7168   ;;  %s68_s11 = smov 126   ;;  %s118_s0 = inlined_call_operand.vmem [shape: f32[4,8], index: 0, kind: input, shape index: {}]   ;;  %s119_s1 = inlined_call_operand.vmem [shape: f32[32,1], index: 1, kind: output, shape index: {}]  }
   0x1   :  { %v5_v0 = vld [vmem:[%s118_s0] sm:$0xf]  ;;  %s66_s0 = smov 127   ;;  %s69_s12 = smov 124  }
   0x2   :  { %6 = vst [vmem:[#allocation0] sm:$0xf] %v5_v0  ;;  %s70_s13 = smov 123   ;;  %s71_s14 = smov 122  }
   0x3   :  { %s72_s15 = smov 121  }
   0x9   :  { %v10_v1 = vld [vmem:[#allocation0] sm:$0xf]  }
   0xa   :  { %v22_v2 = vld [vmem:[#allocation0] sm:$0xf]   ;;  %11 = vrot.lane.b32.xlu0 %v10_v1, %s66_s0 }
   0xb   :  { %23 = vrot.lane.b32.xlu1 %v22_v2, %s67_s8  ;;  %v16_v3 = vld [vmem:[#allocation0] sm:$0xf]  }
   0xc   :  { %v28_v4 = vld [vmem:[#allocation0] sm:$0xf]  }
   0xd   :  { %v7_v5 = vld [vmem:[#allocation0] sm:$0xf]  }
   0xe   :  { %9 = vst.msk [vmem:[%s119_s1] ss:$8 sm:$0xf] %vm8_vm0, %v7_v5   ;;  %17 = vrot.lane.b32.xlu0 %v16_v3, %s68_s11  ;;  %v34_v6 = vld [vmem:[#allocation0] sm:$0xf]  }
   0xf   :  { %29 = vrot.lane.b32.xlu1 %v28_v4, %s69_s12  ;;  %v40_v7 = vld [vmem:[#allocation0] sm:$0xf]  }
  0x10   :  { %v46_v8 = vld [vmem:[#allocation0] sm:$0xf]  }
  0x12   :  { %35 = vrot.lane.b32.xlu0 %v34_v6, %s70_s13 }
  0x13   :  { %41 = vrot.lane.b32.xlu1 %v40_v7, %s71_s14 }
  0x16   :  { %47 = vrot.lane.b32.xlu0 %v46_v8, %s72_s15 }
  0x7c   :  { %v12_v9 = vpop.permute.xlu0 %11  }
  0x7d   :  { %v24_v10 = vpop.permute.xlu1 %23   ;;  %52 = vst.msk [vmem:[%s119_s1 + $0x1] ss:$8 sm:$0xf] %vm8_vm0, %v12_v9  }
  0x7e   :  { %54 = vst.msk [vmem:[%s119_s1 + $0x3] ss:$8 sm:$0xf] %vm8_vm0, %v24_v10  }
  0x80   :  { %v18_v11 = vpop.permute.xlu0 %17  }
  0x81   :  { %v30_v12 = vpop.permute.xlu1 %29   ;;  %53 = vst.msk [vmem:[%s119_s1 + $0x2] ss:$8 sm:$0xf] %vm8_vm0, %v18_v11  }
  0x82   :  { %55 = vst.msk [vmem:[%s119_s1 + $0x4] ss:$8 sm:$0xf] %vm8_vm0, %v30_v12  }
  0x84   :  { %v36_v13 = vpop.permute.xlu0 %35  }
  0x85   :  { %v42_v14 = vpop.permute.xlu1 %41   ;;  %56 = vst.msk [vmem:[%s119_s1 + $0x5] ss:$8 sm:$0xf] %vm8_vm0, %v36_v13  }
  0x86   :  { %57 = vst.msk [vmem:[%s119_s1 + $0x6] ss:$8 sm:$0xf] %vm8_vm0, %v42_v14  }
  0x88   :  { %v48_v15 = vpop.permute.xlu0 %47  }
  0x89   :  { %58 = vst.msk [vmem:[%s119_s1 + $0x7] ss:$8 sm:$0xf] %vm8_vm0, %v48_v15  }

// kernel: attention_layer_forward.1
= control target key start
LH: loop header
LB: loop body
LE: loop exit
PB: predicated region body
PF: predicated region fallthrough
CT: control target
= control target key end

     0   :  { %s1538_s0 = inlined_call_operand.vmem [shape: f32[2,8,32], index: 0, kind: input, shape index: {}]   ;;  %s1539_s1 = inlined_call_operand.vmem [shape: f32[32,32], index: 1, kind: input, shape index: {}]   ;;  %s1540_s2 = inlined_call_operand.vmem [shape: f32[1,32], index: 2, kind: input, shape index: {}]   ;;  %s1541_s3 = inlined_call_operand.vmem [shape: f32[32,32], index: 3, kind: input, shape index: {}]   ;;  %s1542_s4 = inlined_call_operand.vmem [shape: f32[32,32], index: 4, kind: input, shape index: {}]   ;;  %s1543_s5 = inlined_call_operand.vmem [shape: f32[32,32], index: 5, kind: input, shape index: {}]   ;;  %s1544_s6 = inlined_call_operand.vmem [shape: f32[32,1], index: 6, kind: input, shape index: {}]   ;;  %s1545_s7 = inlined_call_operand.vmem [shape: f32[32,32], index: 7, kind: input, shape index: {}]   ;;  %s1546_s8 = inlined_call_operand.vmem [shape: f32[1,32], index: 8, kind: input, shape index: {}]   ;;  %s1547_s9 = inlined_call_operand.hbm [shape: f32[2,8,32], index: 9, kind: output, shape index: {0}]   ;;  %s1548_s10 = inlined_call_operand.vmem [shape: f32[2,8,32], index: 10, kind: output, shape index: {1}]   ;;  %s1549_s11 = inlined_call_operand.vmem [shape: f32[2,8,1], index: 11, kind: output, shape index: {2}]  }
   0x1   :  { %1550 = sst [smem:[#allocation5_spill]] %s1538_s0 }
   0x2   :  { %1551 = sst [smem:[#allocation6_spill]] %s1539_s1 }
   0x3   :  { %1552 = sst [smem:[#allocation7_spill]] %s1540_s2 }
   0x4   :  { %17 = vsyncpa [#allocation3], 0 }
   0x5   :  { %19 = vsyncpa [#allocation3 + $0x1], 0  ;;  %s1311_s17 = smov 0   ;;  %s1313_s18 = smov 0  }
   0x6   :  { %s1315_s19 = smov 0   ;;  %s1317_s20 = smov 0  }
   0x7 LB: > { %s1332_s21 = sadd.s32 4294967295, %s1246_s20   ;;  %s1025_s22 = sadd.s32 4294967294, %s1246_s20   ;;  %s1246_s20 = sphi %s1317_s20, %s1561_s20   ;;  %s1242_s19 = sphi %s1315_s19, %s1560_s19   ;;  %s1238_s18 = sphi %s1313_s18, %s1559_s18   ;;  %s1234_s17 = sphi %s1311_s17, %s1558_s17  }
   0x8   : > { %s1336_s23 = sadd.s32 1, %s1246_s20   ;;  %s226_s24 = sadd.s32 1, %s1242_s19 }
   0x9   : > { %s223_s25 = ssub.s32 %s1246_s20, %s1336_s23  ;;  %p236_p0 = scmp.ne.s32.totalorder %s1242_s19, %s1238_s18 }
   0xa   : > { %p224_p1 = scmp.eq.s32.totalorder %s223_s25, 0  ;;  %p237_p2 = scmp.eq.s32.totalorder %s1332_s21, 1 }
   0xb   : > { %p242_p3 = scmp.ne.s32.totalorder %s1238_s18, %s1234_s17  ;;  %p243_p4 = scmp.eq.s32.totalorder %s1025_s22, 1 }
   0xc   : > { %s1347_s26 = scalar_select %p224_p1, %s1242_s19, %s226_s24  }
   0xd   : > { %p1349_p5 = por %p237_p2, %p236_p0  ;;  %p1353_p6 = por %p243_p4, %p242_p3 }
   0xe   : > { %p1028_p7 = scmp.ge.s32.totalorder %s1246_s20, 1  ;;  %p344_p8 = scmp.lt.s32.totalorder %s1246_s20, 3 }
  0x10   : > { %p345_p9 = pnand %p1028_p7, %p344_p8 }
  0x11   : > { %s1555_s1 = sld [smem:[#allocation6_spill]] (!%p345_p9)  ;;  %p391_p10 = scmp.lt.s32.totalorder (!%p345_p9), %s1332_s21, 1 }
  0x12   : > { %348 = sbr.rel (%p345_p9) target bundleno = 1187 (0x4a3), region = 56  ;;  %s1556_s0 = sld [smem:[#allocation5_spill]] (!%p345_p9) }
  0x13   : > { %s1557_s2 = sld [smem:[#allocation7_spill]] (!%p345_p9) }
  0x17   : > { %v407_v0 = vld [vmem:[%s1555_s1 + $0x18] sm:$0xff]  ;;  %v1248_v1 = vmov 0.0   ;;  %v406_v2 = vld [vmem:[%s1555_s1 + $0x10] sm:$0xff]  ;;  %vm1249_vm0 = vmmov 0   ;;  %s392_s16 = scalar_select %p391_p10, %s1332_s21, 1  ;;  %v405_v5 = vld [vmem:[%s1555_s1 + $0x8] sm:$0xff] }
  0x18   : > { %1075 = vmatprep.subr.mxu0 %v1248_v1  ;;  %1083 = vmatprep.mubr.msk.f32.mxu0 %vm1249_vm0, %v1248_v1  ;;  %v492_v3 = vld [vmem:[%s1541_s3 + $0x18] sm:$0xff]  ;;  %v491_v4 = vld [vmem:[%s1541_s3 + $0x10] sm:$0xff]  ;;  %v404_v6 = vld [vmem:[%s1555_s1] sm:$0xff]  ;;  %vm415_vm1 = vcmask 261120   ;;  %vm888_vm2 = vcmask 7168  }
  0x19   : > { %1076 = vmatpush3.msra.mxu0 %v407_v0  ;;  %1086 = vmatprep.subr.mxu1 %v1248_v1  ;;  %s1381_s30 = sshll.u32 %s392_s16, 3  ;;  %v490_v8 = vld [vmem:[%s1541_s3 + $0x8] sm:$0xff]  ;;  %v489_v9 = vld [vmem:[%s1541_s3] sm:$0xff]  ;;  %v575_v17 = vld [vmem:[%s1543_s5 + $0x18] sm:$0xff] }
  0x1a   : > { %1077 = vmatprep.subr.mxu0 %v1248_v1  ;;  %1087 = vmatpush3.msra.mxu1 %v492_v3  ;;  %s394_s22 = scalar_lea.vmem %s1556_s0, %s1381_s30  ;;  %v1033_v10 = vld [vmem:[%s1557_s2] ss:$0 sm:$0xff]  ;;  %v574_v18 = vld [vmem:[%s1543_s5 + $0x10] sm:$0xff]  ;;  %v573_v19 = vld [vmem:[%s1543_s5 + $0x8] sm:$0xff]  ;;  %s398_s29 = scalar_lea.vmem %s1548_s10, %s1381_s30 }
  0x1b   : > { %1078 = vmatpush3.msra.mxu0 %v406_v2  ;;  %1088 = vmatprep.subr.mxu1 %v1248_v1  ;;  %v403_v7 = vld [vmem:[%s394_s22] sm:$0xff]  ;;  %v654_v25 = vld [vmem:[%s1542_s4 + $0x18] sm:$0xff]  ;;  %v653_v26 = vld [vmem:[%s1542_s4 + $0x10] sm:$0xff]  ;;  %s402_s15 = scalar_lea.vmem %s1549_s11, %s1381_s30  ;;  %s376_s22 = sand.u32 1, %s1238_s18  }
  0x1c   : > { %1079 = vmatprep.subr.mxu0 %v1248_v1  ;;  %1089 = vmatpush3.msra.mxu1 %v491_v4  ;;  %v572_v20 = vld [vmem:[%s1543_s5] sm:$0xff]  ;;  %v652_v27 = vld [vmem:[%s1542_s4 + $0x8] sm:$0xff]  ;;  %v731_v29 = vld [vmem:[%s1545_s7 + $0x18] sm:$0xff]  ;;  %s1029_s16 = sshll.u32 %s376_s22, 3  ;;  %s891_s13 = scalar_lea.sflag [#allocation3], %s376_s22 }
  0x1d   : > { %1080 = vmatpush3.msra.mxu0 %v405_v5  ;;  %1090 = vmatprep.subr.mxu1 %v1248_v1  ;;  %v651_v28 = vld [vmem:[%s1542_s4] sm:$0xff]  ;;  %v730_v30 = vld [vmem:[%s1545_s7 + $0x10] sm:$0xff]  ;;  %v729_v31 = vld [vmem:[%s1545_s7 + $0x8] sm:$0xff]  ;;  %s378_s12 = scalar_lea.vmem [#allocation2], %s1029_s16 }
  0x1e   : > { %1081 = vmatprep.subr.mxu0 %v1248_v1  ;;  %1094 = vmatprep.mubr.msk.f32.mxu1 %vm1249_vm0, %v1248_v1  ;;  %v815_v36 = vld [vmem:[%s1544_s6 + $0x18] sm:$0xff]  ;;  %v814_v37 = vld [vmem:[%s1544_s6 + $0x10] sm:$0xff]  ;;  %v813_v38 = vld [vmem:[%s1544_s6 + $0x8] sm:$0xff]  ;;  %s912_s0 = sshll.u32 %s378_s12, 4  ;;  %s913_s0 = int_to_ptr.vmem [resolvable:$true] %s912_s0 }
  0x1f   : > { %1082 = vmatpush3.msra.mxu0 %v404_v6  ;;  %1091 = vmatpush3.msra.mxu1 %v490_v8  ;;  %v812_v39 = vld [vmem:[%s1544_s6] sm:$0xff]  ;;  %s1186_s14 = scalar_lea.vmem %s913_s0, 128 }
  0x20   : > { %1084 = vmatmul.mubr.msk.f32.vlgmr.msra.gmra.mxu0 %vm415_vm1, %v403_v7  ;;  %1097 = vmatprep.subr.mxu0 %v1248_v1  ;;  %v728_v40 = vld [vmem:[%s1545_s7] sm:$0xff]  ;;  %p1187_p11 = scmp.ne.s32.totalorder %s913_s0, %s1186_s14 }
  0x21   : > { %1105 = vmatprep.mubr.msk.f32.mxu0 %vm1249_vm0, %v1248_v1  ;;  %1092 = vmatprep.subr.mxu1 %v1248_v1  ;;  %v1038_v45 = vld [vmem:[%s1546_s8] ss:$0 sm:$0xff] }
  0x22   : > { %1093 = vmatpush3.msra.mxu1 %v489_v9  ;;  %1098 = vmatpush3.msra.mxu0 %v575_v17  ;;  %p1188_p12 = pnand %p1187_p11, %p1349_p5 }
  0x23   : > { %1108 = vmatprep.subr.mxu1 %v1248_v1  ;;  %1099 = vmatprep.subr.mxu0 %v1248_v1 }
  0x24   : > { %1100 = vmatpush3.msra.mxu0 %v574_v18  ;;  %p1189_p13 = pneg %p1188_p12 }
  0x25   : > { %1101 = vmatprep.subr.mxu0 %v1248_v1 }
  0x26   : > { %1102 = vmatpush3.msra.mxu0 %v573_v19 }
  0x27   : > { %1103 = vmatprep.subr.mxu0 %v1248_v1 }
  0x28   : > { %1104 = vmatpush3.msra.mxu0 %v572_v20 }
  0x29   : > { %1119 = vmatprep.subr.mxu0 %v1248_v1 }
  0xe0   : > { %v485_v11 = vpop.f32.mrf.mxu0 }
  0xe1   : > { %v486_v12 = vadd.f32 %v1033_v10, %v485_v11 }
  0xe2   : > { %v1085_v13 = vpop.f32.mrf.mxu0 }
  0xe3   : > { %1095 = vmatmul.mubr.msk.f32.vlgmr.msra.gmra.mxu1 %vm415_vm1, %v486_v12 }
  0xe4   : > { %1116 = vmatprep.mubr.msk.f32.mxu1 %vm1249_vm0, %v1248_v1  ;;  %1109 = vmatpush3.msra.mxu1 %v654_v25 }
  0xe5   : > { %1110 = vmatprep.subr.mxu1 %v1248_v1 }
  0xe6   : > { %1111 = vmatpush3.msra.mxu1 %v653_v26 }
  0xe7   : > { %1112 = vmatprep.subr.mxu1 %v1248_v1 }
  0xe8   : > { %1113 = vmatpush3.msra.mxu1 %v652_v27 }
  0xe9   : > { %1114 = vmatprep.subr.mxu1 %v1248_v1 }
  0xea   : > { %1115 = vmatpush3.msra.mxu1 %v651_v28 }
  0xeb   : > { %1130 = vmatprep.subr.mxu1 %v1248_v1 }
 0x1a3   : > { %v562_v14 = vpop.f32.mrf.mxu1 }
 0x1a4   : > { %v566_v15 = vsel %vm415_vm1, %v562_v14, -inf }
 0x1a5   : > { %v1096_v16 = vpop.f32.mrf.mxu1  ;;  %567 = vmax.xlane.f32.xlu0 %v566_v15 }
 0x22e   : > { %v568_v21 = vpop.xlane.xlu0 %567 }
 0x22f   : > { %v569_v22 = vsub.f32 %v562_v14, %v568_v21 }
 0x231   : > { %v570_v23 = vmul.f32 1.442695, %v569_v22 }
 0x233   : > { %1182 = vpow2.f32 %v570_v23 }
 0x240   : > { %v1183_v24 = vpop.eup %1182 }
 0x241   : > { %1106 = vmatmul.mubr.msk.f32.vlgmr.msra.gmra.mxu0 %vm415_vm1, %v1183_v24 }
 0x242   : > { %1127 = vmatprep.mubr.msk.f32.mxu0 %vm1249_vm0, %v1248_v1  ;;  %1120 = vmatpush3.msra.mxu0 %v731_v29 }
 0x243   : > { %1121 = vmatprep.subr.mxu0 %v1248_v1 }
 0x244   : > { %1122 = vmatpush3.msra.mxu0 %v730_v30 }
 0x245   : > { %1123 = vmatprep.subr.mxu0 %v1248_v1 }
 0x246   : > { %1124 = vmatpush3.msra.mxu0 %v729_v31 }
 0x247   : > { %1125 = vmatprep.subr.mxu0 %v1248_v1 }
 0x248   : > { %1126 = vmatpush3.msra.mxu0 %v728_v40 }
 0x301   : > { %v645_v32 = vpop.f32.mrf.mxu0 }
 0x302   : > { %1184 = vrcp.f32 %v645_v32 }
 0x303   : > { %v1107_v33 = vpop.f32.mrf.mxu0 }
 0x30f   : > { %v1185_v34 = vpop.eup %1184 }
 0x310   : > { %v650_v35 = vmul.f32 %v1185_v34, %v1183_v24 }
 0x312   : > { %1117 = vmatmul.mubr.msk.f32.vlgmr.msra.gmra.mxu1 %vm415_vm1, %v650_v35  ;;  %887 = vst.msk [vmem:[%s398_s29] sm:$0xff] %vm415_vm1, %v650_v35  ;;  %s1042_s29 = sshll.u32 %s1332_s21, 7  ;;  %s1250_s21 = smov [#allocation2]  }
 0x313   : > { %1131 = vmatpush3.msra.mxu1 %v815_v36  ;;  %1138 = vmatprep.mubr.msk.f32.mxu1 %vm1249_vm0, %v1248_v1  ;;  %s1502_s30 = scalar_lea.hbm %s1547_s9, %s1042_s29 }
 0x314   : > { %1132 = vmatprep.subr.mxu1 %v1248_v1 }
 0x315   : > { %1133 = vmatpush3.msra.mxu1 %v814_v37 }
 0x316   : > { %1134 = vmatprep.subr.mxu1 %v1248_v1 }
 0x317   : > { %1135 = vmatpush3.msra.mxu1 %v813_v38 }
 0x318   : > { %1136 = vmatprep.subr.mxu1 %v1248_v1 }
 0x319   : > { %1137 = vmatpush3.msra.mxu1 %v812_v39 }
 0x31a   : > { %1139 = vmatmul.mubr.msk.f32.vlgmr.msra.gmra.mxu1 %vm415_vm1, %v650_v35 }
 0x3d2   : > { %v724_v41 = vpop.f32.mrf.mxu1 }
 0x3d3   : > { %1128 = vmatmul.mubr.msk.f32.vlgmr.msra.gmra.mxu0 %vm415_vm1, %v724_v41 }
 0x3d4   : > { %v1118_v42 = vpop.f32.mrf.mxu1 }
 0x3da   : > { %v882_v43 = vpop.f32.mrf.mxu1 }
 0x3db   : > { %889 = vst.msk [vmem:[%s402_s15] sm:$0xff] %vm888_vm2, %v882_v43  ;;  %s1190_s15 = sshll.u32 %s1250_s21, 4  ;;  %s1191_s15 = int_to_ptr.vmem [resolvable:$false] %s1190_s15 }
 0x3dc   : > { %v1140_v44 = vpop.f32.mrf.mxu1  ;;  %s1192_s16 = scalar_lea.vmem %s1191_s15, 256  ;;  %p1193_p0 = scmp.lt.s32.totalorder %s913_s0, %s1191_s15 }
 0x3dd   : > { %p1194_p1 = scmp.lt.s32.totalorder %s1192_s16, %s1186_s14 }
 0x3df   : > { %p1195_p2 = por %p1194_p1, %p1193_p0 }
 0x3e1   : > { %p1196_p3 = pnand %p1195_p2, %p1189_p13 }
 0x493   : > { %v808_v46 = vpop.f32.mrf.mxu0 }
 0x494   : > { %v809_v47 = vadd.f32 %v1038_v45, %v808_v46 }
 0x495   : > { %v1129_v48 = vpop.f32.mrf.mxu0 }
 0x496   : > { %886 = vst.msk [vmem:[%s378_s12] sm:$0xff] %vm415_vm1, %v809_v47 }
 0x497   : > { %1199 = shalt.err (!%p1196_p3)
}
 0x498   : > { %s1200_s1 = scalar_lea.hbm %s1502_s30, 128  ;;  %s1204_s24 = scalar_lea.hbm %s1547_s9, 256 }
 0x499   : > { %p1201_p4 = scmp.ne.s32.totalorder %s1502_s30, %s1200_s1  ;;  %p1205_p9 = scmp.lt.s32.totalorder %s1502_s30, %s1547_s9 }
 0x49a   : > { %p1206_p10 = scmp.lt.s32.totalorder %s1204_s24, %s1200_s1 }
 0x49b   : > { %p1202_p7 = pnand %p1201_p4, %p1349_p5 }
 0x49c   : > { %p1207_p11 = por %p1206_p10, %p1205_p9 }
 0x49d   : > { %p1203_p8 = pneg %p1202_p7 }
 0x49f   : > { %p1208_p12 = pnand %p1207_p11, %p1203_p8 }
 0x4a1   : > { %1211 = shalt.err (!%p1208_p12)
}
 0x4a2   : > { %1141 = dma.vmem_to_hbm [thread:$0]  (%p1349_p5), %s913_s0, 128, %s1502_s30, %s891_s13  }
 0x4a3 PF: > { %p1147_p13 = scmp.ge.s32.totalorder %s1246_s20, 2  ;;  %s930_s12 = sand.u32 1, %s1234_s17  }
 0x4a4   : > { %s931_s14 = scalar_lea.sflag [#allocation3], %s930_s12 }
 0x4a5   : > { %p1144_p0 = pnand %p1147_p13, %p1353_p6 }
 0x4a7   : > { %p1145_p1 = pneg %p1144_p0 }
 0x4a9   : > { %1229 = dma.done.wait (%p1145_p1), %s931_s14, 128  }
 0x4aa   : > { %1231 = vsyncadd (%p1145_p1), %s931_s14, 4294967168  ;;  %p22_p2 = scmp.ge.s32.totalorder %s1336_s23, 4   ;;  %s1558_s17 = smov %s1238_s18 }
 0x4ab   : > { %s1559_s18 = smov %s1242_s19  ;;  %s1560_s19 = smov %s1347_s26 }
 0x4ac   : > { %s1561_s20 = smov %s1336_s23  ;;  %24 = sbr.rel (!%p22_p2) target bundleno = 7 (0x7), region = 115 }
 0x4b1   :  { %950 = vsyncpa [#allocation3], 1 }
 0x4b2   :  { %952 = vsyncpa [#allocation3 + $0x1], 1 }

</bundles_post_ra>
